<compile_context>
chip_gen: v7x
topology: tpu7x:2x2x1
jax: 0.10.0
libtpu: 0.0.40
codegen_flags: <defaults>
</compile_context>

<pallas_src>
import math

import jax
import jax.numpy as jnp
from jax.experimental import pallas as pl
from jax.experimental.pallas import tpu as pltpu


def _drop_path_kernel(x_ref, scale_ref, o_ref):
    # x_ref: (TB, TF) tile, scale_ref: (TB, 1) per-row keep/scale factor.
    # Pure VPU broadcast-multiply; the kernel is HBM-bandwidth bound.
    o_ref[...] = x_ref[...] * scale_ref[...]


def _pick_tile(dim, candidates):
    """Largest candidate that evenly divides `dim`; else the whole dim
    (a full-extent block is always a legal block shape)."""
    for c in candidates:
        if c <= dim and dim % c == 0:
            return c
    return dim


def _row_repack_factor(batch, feat):
    """Rows-per-sample R so that (batch*R) % 8 == 0 (full sublanes) and
    (feat // R) % 128 == 0 (full lanes).  Falls back to 1 if impossible."""
    r_min = 8 // math.gcd(batch, 8)
    for r in (r_min, 2 * r_min, 4 * r_min):
        if r <= feat and feat % r == 0 and (feat // r) % 128 == 0:
            return r
    return 1


def drop_path_pallas(x, drop_prob: float, key, training: bool = True):
    """Pallas implementation of timm-style DropPath (stochastic depth).

    Returns x unchanged if drop_prob == 0 or not training, else
    x / keep_prob * bernoulli_keep_mask (mask broadcast per sample).
    """
    if drop_prob == 0.0 or not training:
        return x

    keep_prob = 1.0 - drop_prob
    B = x.shape[0]
    orig_shape = x.shape
    F = 1
    for d in x.shape[1:]:
        F *= d

    # Per-sample mask/scale computed in float32 (avoids keep-decision flips
    # and scale rounding for low-precision inputs), cast once at the end.
    # random_tensor = floor(keep_prob + U[0,1)) in {0., 1.}
    u = jax.random.uniform(key, (B, 1), dtype=jnp.float32)
    scale = (jnp.floor(keep_prob + u) / keep_prob).astype(x.dtype)  # (B, 1)

    # Repack small batches so sublanes are full: (B, F) -> (B*R, F//R),
    # repeating the per-sample scale R times.
    R = _row_repack_factor(B, F)
    rows, cols = B * R, F // R
    xf = x.reshape(rows, cols)
    scale_rows = jnp.broadcast_to(scale, (B, R)).reshape(rows, 1)

    # Lane-dense tiles sized for the smallest-VMEM generation (v7x: 64 MiB
    # physical / 32 MiB scoped): a 256x1024 fp32 tile is 1 MiB, so
    # double-buffered input + output stays well under the scoped default on
    # every generation while still amortizing per-step overhead.
    tb = _pick_tile(rows, (256, 128, 64, 32, 16, 8))
    tf = _pick_tile(cols, (1024, 512, 256, 128))
    grid = (rows // tb, cols // tf)

    out = pl.pallas_call(
        _drop_path_kernel,
        out_shape=jax.ShapeDtypeStruct((rows, cols), x.dtype),
        grid=grid,
        in_specs=[
            pl.BlockSpec((tb, tf), lambda i, j: (i, j)),
            pl.BlockSpec((tb, 1), lambda i, j: (i, 0)),
        ],
        out_specs=pl.BlockSpec((tb, tf), lambda i, j: (i, j)),
        compiler_params=pltpu.CompilerParams(
            # Independent output tiles on both axes -> megacore-shardable.
            dimension_semantics=("parallel", "parallel"),
        ),
    )(xf, scale_rows)

    return out.reshape(orig_shape)


class DropPath:
    """Minimal stateless analogue of the PyTorch DropPath module."""

    def __init__(self, drop_prob=None):
        self.drop_prob = 0.0 if drop_prob is None else float(drop_prob)
        self.training = True

    def __call__(self, x, key):
        return drop_path_pallas(x, self.drop_prob, key, self.training)


if __name__ == "__main__":
    key = jax.random.PRNGKey(0)
    kx, kmask = jax.random.split(key)

    # Small NCHW-shaped input consistent with a ViT-style feature map.
    B, C, H, W = 2, 4, 16, 16
    x = jax.random.normal(kx, (B, C, H, W), dtype=jnp.float32)

    module = DropPath(drop_prob=0.25)
    module.training = True
    out = jax.block_until_ready(module(x, kmask))

    # Reference check in plain JAX (same mask generation with same key).
    keep_prob = 1.0 - module.drop_prob
    u = jax.random.uniform(kmask, (B, 1), dtype=jnp.float32)
    mask = jnp.floor(keep_prob + u).reshape((B,) + (1,) * (x.ndim - 1))
    ref = x / keep_prob * mask
    assert out.shape == x.shape and out.dtype == x.dtype
    assert jnp.allclose(out, ref, atol=1e-6, rtol=1e-6)

    # Eval-mode / zero-prob path must be identity.
    module.training = False
    out_eval = jax.block_until_ready(module(x, kmask))
    assert jnp.array_equal(out_eval, x)

    print("KERNEL_OK")
</pallas_src>

<mosaic_0001>
module attributes {stable_mosaic.version = 11 : i64} {
  func.func @_drop_path_kernel(%arg0: i32, %arg1: i32, %arg2: memref<8x256xf32, #tpu.memory_space<vmem>>, %arg3: memref<8x1xf32, #tpu.memory_space<vmem>>, %arg4: memref<8x256xf32, #tpu.memory_space<vmem>>) attributes {dimension_semantics = [#tpu.dimension_semantics<parallel>, #tpu.dimension_semantics<parallel>], iteration_bounds = array<i64: 1, 1>, scalar_prefetch = 0 : i64, scratch_operands = 0 : i64, tpu.core_type = #tpu.core_type<tc>, window_params = [{transform_indices = @transform_0, window_bounds = array<i64: 8, 256>}, {transform_indices = @transform_1, window_bounds = array<i64: 8, 1>}, {transform_indices = @transform_2, window_bounds = array<i64: 8, 256>}]} {
    %c0 = arith.constant 0 : index
    %c0_0 = arith.constant 0 : index
    %0 = vector.load %arg2[%c0, %c0_0] : memref<8x256xf32, #tpu.memory_space<vmem>>, vector<8x256xf32>
    %c0_1 = arith.constant 0 : index
    %c0_2 = arith.constant 0 : index
    %1 = vector.load %arg3[%c0_1, %c0_2] : memref<8x1xf32, #tpu.memory_space<vmem>>, vector<8x1xf32>
    %2 = vector.broadcast %1 : vector<8x1xf32> to vector<8x256xf32>
    %3 = arith.mulf %0, %2 : vector<8x256xf32>
    %c0_3 = arith.constant 0 : index
    %c0_4 = arith.constant 0 : index
    %4 = vector.load %arg4[%c0_3, %c0_4] : memref<8x256xf32, #tpu.memory_space<vmem>>, vector<8x256xf32>
    tpu.vector_store %arg4[%c0_3, %c0_4], %3 {strides = array<i32>} : memref<8x256xf32, #tpu.memory_space<vmem>>, vector<8x256xf32>,
    return
  }
  func.func @transform_0(%arg0: i32, %arg1: i32) -> (i32, i32) {
    %c0_i32 = arith.constant 0 : i32
    return %arg0, %arg1 : i32, i32
  }
  func.func @transform_1(%arg0: i32, %arg1: i32) -> (i32, i32) {
    %c0_i32 = arith.constant 0 : i32
    %c0_i32_0 = arith.constant 0 : i32
    return %arg0, %c0_i32 : i32, i32
  }
  func.func @transform_2(%arg0: i32, %arg1: i32) -> (i32, i32) {
    %c0_i32 = arith.constant 0 : i32
    return %arg0, %arg1 : i32, i32
  }
}

</mosaic_0001>

<bundles_post_ra>
// kernel: tpu_custom_call.1
= control target key start
LH: loop header
LB: loop body
LE: loop exit
PB: predicated region body
PF: predicated region fallthrough
CT: control target
= control target key end

     0   :  { %7 = vsyncpa [#allocation3], 0  ;;  %s148_s0 = inlined_call_operand.hbm [shape: f32[8,256], index: 0, kind: input, shape index: {}]   ;;  %s149_s1 = inlined_call_operand.vmem [shape: f32[8,1], index: 1, kind: input, shape index: {}]   ;;  %s150_s2 = inlined_call_operand.hbm [shape: f32[8,256], index: 2, kind: output, shape index: {}]  }
   0x1   :  { %8 = vsyncpa [#allocation4], 0  ;;  %s103_s9 = smov [#allocation2]   ;;  %s55_s13 = scalar_lea.hbm %s148_s0, 256 }
   0x2   :  { %s15_s10 = sshll.u32 %s103_s9, 4  ;;  %p56_p0 = scmp.ne.s32.totalorder %s148_s0, %s55_s13  ;;  %s16_s10 = int_to_ptr.vmem [resolvable:$true] %s15_s10 }
   0x3   :  { %p59_p1 = scmp.lt.u32.totalorder %s55_s13, %s148_s0 }
   0x5   :  { %p61_p2 = pnand %p59_p1, %p56_p0 }
   0x7   :  { %64 = shalt.err (!%p61_p2)
}
   0x8   :  { %s65_s18 = scalar_lea.vmem %s16_s10, 256  ;;  %p70_p4 = scmp.lt.s32.totalorder %s16_s10, %s16_s10 }
   0x9   :  { %p66_p3 = scmp.ne.s32.totalorder %s16_s10, %s65_s18  ;;  %p71_p5 = scmp.lt.s32.totalorder %s65_s18, %s65_s18 }
   0xb   :  { %p72_p6 = por %p71_p5, %p70_p4 }
   0xd   :  { %p73_p7 = pnand %p72_p6, %p66_p3 }
   0xf   :  { %76 = shalt.err (!%p73_p7)
}
  0x10   :  { %18 = dma.hbm_to_vmem [thread:$0]  %s148_s0, 256, %s16_s10, [#allocation3]  }
  0x11   :  { %99 = dma.done.wait [#allocation3], 256  }
  0x12   :  { %100 = vsyncadd [#allocation3], 4294967040  ;;  %v104_v0 = vmov 0   ;;  %v26_v1 = vld [vmem:[%s149_s1] sm:$0xff]  ;;  %v25_v3 = vld [vmem:[#allocation2 + $0x8] sm:$0xff]  ;;  %s105_s23 = smov [#allocation5]  }
  0x13   :  { %54 = vset.pattern.permute.xlu0 %v104_v0  ;;  %v24_v2 = vld [vmem:[#allocation2] sm:$0xff]  ;;  %s42_s24 = sshll.u32 %s105_s23, 4  ;;  %s43_s24 = int_to_ptr.vmem [resolvable:$true] %s42_s24 }
  0x14   :  { %29 = vperm.xlu0 %54, %v26_v1   ;;  %s77_s0 = scalar_lea.vmem %s43_s24, 256  ;;  %p82_p9 = scmp.lt.s32.totalorder %s43_s24, %s43_s24 }
  0x15   :  { %p78_p8 = scmp.ne.s32.totalorder %s43_s24, %s77_s0  ;;  %p83_p10 = scmp.lt.s32.totalorder %s77_s0, %s77_s0 }
  0x17   :  { %p84_p11 = por %p83_p10, %p82_p9 }
  0x19   :  { %p85_p12 = pnand %p84_p11, %p78_p8 }
  0x93   :  { %v30_v4 = vpop.permute.xlu0 %29 }
  0x94   :  { %v32_v5 = vmul.f32 %v30_v4, %v24_v2  ;;  %v33_v6 = vmul.f32 %v30_v4, %v25_v3 }
  0x96   :  { %34 = vst [vmem:[#allocation5] sm:$0xff] %v32_v5  ;;  %35 = vst [vmem:[#allocation5 + $0x8] sm:$0xff] %v33_v6 }
  0x97   :  { %88 = shalt.err (!%p85_p12)
}
  0x98   :  { %s89_s26 = scalar_lea.hbm %s150_s2, 256 }
  0x99   :  { %p90_p13 = scmp.ne.s32.totalorder %s150_s2, %s89_s26  ;;  %p93_p0 = scmp.lt.u32.totalorder %s89_s26, %s150_s2 }
  0x9b   :  { %p95_p1 = pnand %p93_p0, %p90_p13 }
  0x9d   :  { %98 = shalt.err (!%p95_p1)
}
  0x9e   :  { %45 = dma.vmem_to_hbm [thread:$0]  %s43_s24, 256, %s150_s2, [#allocation4]  }
  0x9f   :  { %101 = dma.done.wait [#allocation4], 256  }
  0xa0   :  { %102 = vsyncadd [#allocation4], 4294967040 }
  0xa1   :  { %49 = vsyncpa [#allocation3], 1 }
  0xa2   :  { %50 = vsyncpa [#allocation4], 1 }

</bundles_post_ra>
